<compile_context>
chip_gen: v6e
topology: v6e:2x2x1
jax: 0.10.0
libtpu: 0.0.40
codegen_flags: <defaults>
</compile_context>

<pallas_src>
import jax
import jax.numpy as jnp
from jax import lax
from jax.experimental import pallas as pl
from jax.experimental.pallas import tpu as pltpu

_LANES = 128
_CHANNEL_FORI_THRESHOLD = 16        # static unroll below this, lax.fori_loop above
_CHUNK_TEMP_BYTES = 256 * 1024      # target size of one per-channel f32 chunk temp
_RAGGED_BLOCK_BYTES = 2 * 1024 * 1024  # fallback-path block target (un-chunked body)


def _cdiv(a, b):
    return -(-a // b)


def _round_down(x, m):
    return (x // m) * m


def _largest_divisor_leq(n, cap):
    cap = max(1, min(n, cap))
    for d in range(cap, 0, -1):
        if n % d == 0:
            return d
    return 1


def _chip_generation():
    """Best-effort TPU generation from device_kind (0 if unknown)."""
    try:
        dev = jax.devices()[0]
        if dev.platform != "tpu":
            return 0
        kind = (getattr(dev, "device_kind", "") or "").lower().replace(" ", "")
        for gen in range(9, 1, -1):
            if f"v{gen}" in kind or f"tpu{gen}" in kind:
                return gen
    except Exception:
        return 0
    return 0


def _make_lane_dense_kernel(C, chunk_rows, n_full, tail_rows, gate_dtype, use_fori):
    """Kernel for blocks shaped (TB, C, S_tile, 128).

    x_ref/o_ref: (TB, C, S_tile, 128).  w_ref: SMEM (C,) f32 1x1-conv weights.
    b_ref: SMEM (1,) f32 bias.  The block is processed in sublane-row chunks so
    the f32 logits/attention temporaries stay at a few hundred KiB, independent
    of block size.
    """

    def kernel(x_ref, w_ref, b_ref, o_ref):
        tb = x_ref.shape[0]
        lanes = x_ref.shape[3]
        bias = b_ref[0]
        out_dtype = o_ref.dtype

        def process(r0, rows):
            rs = pl.ds(r0, rows)

            # 1x1-conv logits: f32 channel reduction with SMEM scalar weights (VALU).
            def reduce_one(c, acc):
                xc = x_ref[:, pl.ds(c, 1), rs, :].astype(jnp.float32)
                return acc + xc * w_ref[c]

            if use_fori:
                acc = lax.fori_loop(
                    0, C, reduce_one,
                    jnp.zeros((tb, 1, rows, lanes), jnp.float32), unroll=4)
            else:
                acc = x_ref[:, pl.ds(0, 1), rs, :].astype(jnp.float32) * w_ref[0]
                for c in range(1, C):
                    acc = reduce_one(c, acc)

            attn = jax.nn.sigmoid(acc + bias)           # (TB,1,rows,128) f32, EUP
            gate = attn.astype(gate_dtype)

            # Gate every channel of this chunk (dense (rows, 128) stores).
            def gate_one(c, carry):
                xc = x_ref[:, pl.ds(c, 1), rs, :]
                o_ref[:, pl.ds(c, 1), rs, :] = (
                    xc.astype(gate_dtype) * gate).astype(out_dtype)
                return carry

            if use_fori:
                lax.fori_loop(0, C, gate_one, 0, unroll=4)
            else:
                for c in range(C):
                    gate_one(c, 0)

        def chunk_body(i, carry):
            process(pl.multiple_of(i * chunk_rows, chunk_rows), chunk_rows)
            return carry

        lax.fori_loop(0, n_full, chunk_body, 0, unroll=(n_full <= 2))
        if tail_rows > 0:
            process(n_full * chunk_rows, tail_rows)

    return kernel


def _make_ragged_kernel(gate_dtype):
    """Kernel for blocks shaped (TB, C, L): flattened-spatial fallback path.

    w_ref: VMEM (C, 1) f32.  b_ref: SMEM (1,) f32.  The last spatial block may
    be ragged; out-of-bounds lanes compute garbage that Pallas never stores.
    """

    def kernel(x_ref, w_ref, b_ref, o_ref):
        x = x_ref[...]                                  # (TB, C, L)
        logits = jnp.sum(x.astype(jnp.float32) * w_ref[...],
                         axis=1, keepdims=True) + b_ref[0]
        attn = jax.nn.sigmoid(logits)                   # (TB, 1, L) f32
        o_ref[...] = (x.astype(gate_dtype)
                      * attn.astype(gate_dtype)).astype(o_ref.dtype)

    return kernel


def spatial_attention(features, conv_weight, conv_bias, *,
                      target_block_bytes=None, vmem_limit_bytes=None):
    """features: (N, C, H, W) NCHW (PyTorch convention).
    conv_weight: (C,) (squeezed from Conv2d weight (1, C, 1, 1); any shape with
    C elements is accepted).  conv_bias: () (squeezed from bias (1,)).
    Returns (N, C, H, W), same dtype as features.
    """
    N, C, H, W = features.shape
    HW = H * W
    dtype = features.dtype
    itemsize = jnp.dtype(dtype).itemsize
    pack = max(8, 32 // itemsize)       # sublane packing: 8 f32 / 16 bf16 / 32 int8

    gen = _chip_generation()
    if target_block_bytes is None:
        target_block_bytes = 8 * 1024 * 1024
    if vmem_limit_bytes is None:
        # v4/v5e/v6e: 128 MiB VMEM per core -> a 64 MiB scoped limit is ample.
        # v7x (and unknown): only 64 MiB physical -> stay at 48 MiB.
        vmem_limit_bytes = (64 if gen in (4, 5, 6) else 48) * 1024 * 1024

    # Gate in bf16 on generations with bf16 VALUs; keep f32 elsewhere (v5e).
    gate_dtype = dtype if (dtype == jnp.bfloat16 and gen >= 6) else jnp.float32

    w = conv_weight.reshape(C).astype(jnp.float32)
    b = jnp.reshape(conv_bias, (1,)).astype(jnp.float32)

    cost = pl.CostEstimate(flops=int(3 * N * C * HW),
                           transcendentals=int(N * HW),
                           bytes_accessed=int(2 * N * C * HW * itemsize))
    compiler_params = pltpu.CompilerParams(
        dimension_semantics=("parallel", "parallel"),
        vmem_limit_bytes=vmem_limit_bytes)

    if HW % _LANES == 0:
        # ------------- main path: free reshape to (N, C, S, 128) -------------
        S_total = HW // _LANES
        x = features.reshape(N, C, S_total, _LANES)

        row_bytes = C * _LANES * itemsize               # one S-row, all channels
        if S_total * row_bytes <= target_block_bytes:
            S_tile = S_total                            # full extent (any row count OK)
        else:
            max_rows = max(pack, target_block_bytes // row_bytes)
            S_tile = max(pack, _round_down(max_rows, pack))
        n_s = _cdiv(S_total, S_tile)

        # Fold batch elements when the whole spatial extent fits one block, but
        # keep >= 2 grid steps so megacore parts (v7x: 2 TCs) can split the work.
        TB = 1
        if n_s == 1 and N > 1:
            per_batch = C * S_tile * _LANES * itemsize
            cap = max(1, target_block_bytes // per_batch)
            cap = min(cap, max(1, N // 2))
            TB = _largest_divisor_leq(N, cap)
        # v7x: never run the whole problem as a single grid step on one core.
        if gen >= 7 and (N // TB) * n_s == 1 and S_total >= 2 * pack:
            S_tile = min(S_total, _cdiv(_cdiv(S_total, 2), pack) * pack)
            n_s = _cdiv(S_total, S_tile)

        block_bytes = TB * C * S_tile * _LANES * itemsize
        if 4 * block_bytes > vmem_limit_bytes:
            # TODO(synk): split C across a grid axis (logit accumulator + second
            # gate pass) for very wide channel counts instead of failing.
            raise ValueError(
                f"SpatialAttention block ({block_bytes} B x 4 pipeline buffers) "
                f"exceeds the VMEM limit ({vmem_limit_bytes} B); channel count "
                f"C={C} is too wide for this kernel.")

        # In-kernel row chunking keeps per-chunk f32 temporaries ~_CHUNK_TEMP_BYTES.
        rows_target = max(pack,
                          _round_down(_CHUNK_TEMP_BYTES // (TB * _LANES * 4), pack))
        chunk_rows = min(S_tile, rows_target)
        n_full, tail = divmod(S_tile, chunk_rows)

        kernel = _make_lane_dense_kernel(
            C=C, chunk_rows=chunk_rows, n_full=n_full, tail_rows=tail,
            gate_dtype=gate_dtype, use_fori=(C > _CHANNEL_FORI_THRESHOLD))

        block = (TB, C, S_tile, _LANES)
        out = pl.pallas_call(
            kernel,
            out_shape=jax.ShapeDtypeStruct((N, C, S_total, _LANES), dtype),
            grid=(N // TB, n_s),
            in_specs=[
                pl.BlockSpec(block, lambda nb, sb: (nb, 0, sb, 0)),
                pl.BlockSpec(memory_space=pltpu.MemorySpace.SMEM),   # weights (C,)
                pl.BlockSpec(memory_space=pltpu.MemorySpace.SMEM),   # bias (1,)
            ],
            out_specs=pl.BlockSpec(block, lambda nb, sb: (nb, 0, sb, 0)),
            compiler_params=compiler_params,
            cost_estimate=cost,
        )(x, w, b)
        return out.reshape(N, C, H, W)

    # ---- fallback path: HW not a multiple of 128 (no pad / slice copies) ----
    # Keep x flattened as (N, C, HW); Pallas masks the ragged last spatial
    # block, so HBM is still touched exactly twice.  Blocks stay moderate
    # (~2 MiB) because this body is not row-chunked, so its f32 temporaries
    # scale with the block size.
    x = features.reshape(N, C, HW)
    ragged_target = min(target_block_bytes, _RAGGED_BLOCK_BYTES)
    per_batch = C * HW * itemsize
    if per_batch <= ragged_target:
        L_tile = HW                       # full spatial extent (equals array dim)
        n_l = 1
        TB = 1
        if N > 1:
            cap = max(1, ragged_target // per_batch)
            cap = min(cap, max(1, N // 2))
            TB = _largest_divisor_leq(N, cap)
    else:
        max_lanes = max(_LANES, ragged_target // (C * itemsize))
        L_tile = max(_LANES, _round_down(max_lanes, _LANES))
        n_l = _cdiv(HW, L_tile)
        TB = 1

    block_bytes = TB * C * L_tile * itemsize
    if 4 * block_bytes > vmem_limit_bytes:
        # TODO(synk): split C across a grid axis for very wide channel counts.
        raise ValueError(
            f"SpatialAttention ragged-path block ({block_bytes} B x 4 buffers) "
            f"exceeds the VMEM limit ({vmem_limit_bytes} B); C={C} too wide.")

    block = (TB, C, L_tile)
    out = pl.pallas_call(
        _make_ragged_kernel(gate_dtype),
        out_shape=jax.ShapeDtypeStruct((N, C, HW), dtype),
        grid=(N // TB, n_l),
        in_specs=[
            pl.BlockSpec(block, lambda nb, lb: (nb, 0, lb)),
            pl.BlockSpec((C, 1), lambda nb, lb: (0, 0)),             # weights (C,1)
            pl.BlockSpec(memory_space=pltpu.MemorySpace.SMEM),       # bias (1,)
        ],
        out_specs=pl.BlockSpec(block, lambda nb, lb: (nb, 0, lb)),
        compiler_params=compiler_params,
        cost_estimate=cost,
    )(x, w.reshape(C, 1), b)
    return out.reshape(N, C, H, W)


def spatial_attention_ref(features, conv_weight, conv_bias):
    # Pure-JAX reference (NCHW 1x1 conv + sigmoid + gate).
    C = features.shape[1]
    logits = jnp.einsum("nchw,c->nhw", features, conv_weight.reshape(C)) + conv_bias
    attn = jax.nn.sigmoid(logits)[:, None, :, :]
    return features * attn


if __name__ == "__main__":
    key = jax.random.PRNGKey(0)
    kx, kw, kb = jax.random.split(key, 3)
    conv_bias = jax.random.normal(kb, (), dtype=jnp.float32) * 0.1

    # 1) Primary check: lane-aligned spatial size (H*W % 128 == 0).
    N, C, H, W = 2, 4, 16, 16
    x = jax.random.normal(kx, (N, C, H, W), dtype=jnp.float32)
    conv_weight = jax.random.normal(kw, (C,), dtype=jnp.float32) * 0.5
    y = jax.block_until_ready(spatial_attention(x, conv_weight, conv_bias))
    assert y.shape == (N, C, H, W)
    assert jnp.allclose(y, spatial_attention_ref(x, conv_weight, conv_bias),
                        atol=1e-5, rtol=1e-5), "mismatch vs reference (main path)"

    # 2) Ragged fallback path: H*W not a multiple of 128 (no wrapper pad/slice).
    xr = jax.random.normal(kx, (2, 3, 10, 10), dtype=jnp.float32)
    wr = jax.random.normal(kw, (3,), dtype=jnp.float32) * 0.5
    yr = jax.block_until_ready(spatial_attention(xr, wr, conv_bias))
    assert jnp.allclose(yr, spatial_attention_ref(xr, wr, conv_bias),
                        atol=1e-5, rtol=1e-5), "mismatch vs reference (ragged path)"

    # 3) Larger block exercising the in-kernel row-chunk loop (multiple chunks).
    xc = jax.random.normal(kx, (1, 4, 512, 512), dtype=jnp.float32)
    yc = jax.block_until_ready(spatial_attention(xc, conv_weight, conv_bias))
    assert jnp.allclose(yc, spatial_attention_ref(xc, conv_weight, conv_bias),
                        atol=1e-5, rtol=1e-5), "mismatch vs reference (chunked path)"

    # 4) Wide-ish channel count exercising the fori_loop channel path.
    xf = jax.random.normal(kx, (2, 24, 16, 16), dtype=jnp.float32)
    wf = jax.random.normal(kw, (24,), dtype=jnp.float32) * 0.5
    yf = jax.block_until_ready(spatial_attention(xf, wf, conv_bias))
    assert jnp.allclose(yf, spatial_attention_ref(xf, wf, conv_bias),
                        atol=1e-5, rtol=1e-5), "mismatch vs reference (fori path)"

    print("KERNEL_OK")
</pallas_src>

<mosaic_0001>
module attributes {stable_mosaic.version = 11 : i64} {
  func.func @kernel(%arg0: i32, %arg1: i32, %arg2: memref<1x4x2x128xf32, #tpu.memory_space<vmem>>, %arg3: memref<4xf32, #tpu.memory_space<smem>>, %arg4: memref<1xf32, #tpu.memory_space<smem>>, %arg5: memref<1x4x2x128xf32, #tpu.memory_space<vmem>>) attributes {dimension_semantics = [#tpu.dimension_semantics<parallel>, #tpu.dimension_semantics<parallel>], iteration_bounds = array<i64: 2, 1>, scalar_prefetch = 0 : i64, scratch_operands = 0 : i64, tpu.core_type = #tpu.core_type<tc>, window_params = [{transform_indices = @transform_0, window_bounds = array<i64: 1, 4, 2, 128>}, {transform_indices = @transform_1, window_bounds = array<i64: 4>}, {transform_indices = @transform_2, window_bounds = array<i64: 1>}, {transform_indices = @transform_3, window_bounds = array<i64: 1, 4, 2, 128>}]} {
    %c0 = arith.constant 0 : index
    %0 = memref.load %arg4[%c0] : memref<1xf32, #tpu.memory_space<smem>>
    %c0_i32 = arith.constant 0 : i32
    %c2_i32 = arith.constant 2 : i32
    %1 = arith.muli %c0_i32, %c2_i32 : i32
    %2 = tpu.assume_multiple %1, 2 : i32
    %c0_0 = arith.constant 0 : index
    %c0_1 = arith.constant 0 : index
    %3 = arith.index_cast %2 : i32 to index
    %c0_2 = arith.constant 0 : index
    %4 = vector.load %arg2[%c0_0, %c0_1, %3, %c0_2] : memref<1x4x2x128xf32, #tpu.memory_space<vmem>>, vector<1x1x2x128xf32>
    %c0_3 = arith.constant 0 : index
    %5 = memref.load %arg3[%c0_3] : memref<4xf32, #tpu.memory_space<smem>>
    %6 = vector.broadcast %5 : f32 to vector<1x1x2x128xf32>
    %7 = arith.mulf %4, %6 : vector<1x1x2x128xf32>
    %c0_4 = arith.constant 0 : index
    %c1 = arith.constant 1 : index
    %8 = arith.index_cast %2 : i32 to index
    %c0_5 = arith.constant 0 : index
    %9 = vector.load %arg2[%c0_4, %c1, %8, %c0_5] : memref<1x4x2x128xf32, #tpu.memory_space<vmem>>, vector<1x1x2x128xf32>
    %c1_6 = arith.constant 1 : index
    %10 = memref.load %arg3[%c1_6] : memref<4xf32, #tpu.memory_space<smem>>
    %11 = vector.broadcast %10 : f32 to vector<1x1x2x128xf32>
    %12 = arith.mulf %9, %11 : vector<1x1x2x128xf32>
    %13 = arith.addf %7, %12 : vector<1x1x2x128xf32>
    %c0_7 = arith.constant 0 : index
    %c2 = arith.constant 2 : index
    %14 = arith.index_cast %2 : i32 to index
    %c0_8 = arith.constant 0 : index
    %15 = vector.load %arg2[%c0_7, %c2, %14, %c0_8] : memref<1x4x2x128xf32, #tpu.memory_space<vmem>>, vector<1x1x2x128xf32>
    %c2_9 = arith.constant 2 : index
    %16 = memref.load %arg3[%c2_9] : memref<4xf32, #tpu.memory_space<smem>>
    %17 = vector.broadcast %16 : f32 to vector<1x1x2x128xf32>
    %18 = arith.mulf %15, %17 : vector<1x1x2x128xf32>
    %19 = arith.addf %13, %18 : vector<1x1x2x128xf32>
    %c0_10 = arith.constant 0 : index
    %c3 = arith.constant 3 : index
    %20 = arith.index_cast %2 : i32 to index
    %c0_11 = arith.constant 0 : index
    %21 = vector.load %arg2[%c0_10, %c3, %20, %c0_11] : memref<1x4x2x128xf32, #tpu.memory_space<vmem>>, vector<1x1x2x128xf32>
    %c3_12 = arith.constant 3 : index
    %22 = memref.load %arg3[%c3_12] : memref<4xf32, #tpu.memory_space<smem>>
    %23 = vector.broadcast %22 : f32 to vector<1x1x2x128xf32>
    %24 = arith.mulf %21, %23 : vector<1x1x2x128xf32>
    %25 = arith.addf %19, %24 : vector<1x1x2x128xf32>
    %26 = vector.broadcast %0 : f32 to vector<1x1x2x128xf32>
    %27 = arith.addf %25, %26 : vector<1x1x2x128xf32>
    %28 = arith.negf %27 : vector<1x1x2x128xf32>
    %29 = math.exp %28 : vector<1x1x2x128xf32>
    %cst = arith.constant 1.000000e+00 : f32
    %30 = vector.broadcast %cst : f32 to vector<1x1x2x128xf32>
    %31 = arith.addf %30, %29 : vector<1x1x2x128xf32>
    %32 = arith.divf %30, %31 : vector<1x1x2x128xf32>
    %c0_13 = arith.constant 0 : index
    %c0_14 = arith.constant 0 : index
    %33 = arith.index_cast %2 : i32 to index
    %c0_15 = arith.constant 0 : index
    %34 = vector.load %arg2[%c0_13, %c0_14, %33, %c0_15] : memref<1x4x2x128xf32, #tpu.memory_space<vmem>>, vector<1x1x2x128xf32>
    %35 = arith.mulf %34, %32 : vector<1x1x2x128xf32>
    %c0_16 = arith.constant 0 : index
    %c0_17 = arith.constant 0 : index
    %36 = arith.index_cast %2 : i32 to index
    %c0_18 = arith.constant 0 : index
    %37 = vector.load %arg5[%c0_16, %c0_17, %36, %c0_18] : memref<1x4x2x128xf32, #tpu.memory_space<vmem>>, vector<1x1x2x128xf32>
    tpu.vector_store %arg5[%c0_16, %c0_17, %36, %c0_18], %35 {strides = array<i32>} : memref<1x4x2x128xf32, #tpu.memory_space<vmem>>, vector<1x1x2x128xf32>,
    %c0_19 = arith.constant 0 : index
    %c1_20 = arith.constant 1 : index
    %38 = arith.index_cast %2 : i32 to index
    %c0_21 = arith.constant 0 : index
    %39 = vector.load %arg2[%c0_19, %c1_20, %38, %c0_21] : memref<1x4x2x128xf32, #tpu.memory_space<vmem>>, vector<1x1x2x128xf32>
    %40 = arith.mulf %39, %32 : vector<1x1x2x128xf32>
    %c0_22 = arith.constant 0 : index
    %c1_23 = arith.constant 1 : index
    %41 = arith.index_cast %2 : i32 to index
    %c0_24 = arith.constant 0 : index
    %42 = vector.load %arg5[%c0_22, %c1_23, %41, %c0_24] : memref<1x4x2x128xf32, #tpu.memory_space<vmem>>, vector<1x1x2x128xf32>
    tpu.vector_store %arg5[%c0_22, %c1_23, %41, %c0_24], %40 {strides = array<i32>} : memref<1x4x2x128xf32, #tpu.memory_space<vmem>>, vector<1x1x2x128xf32>,
    %c0_25 = arith.constant 0 : index
    %c2_26 = arith.constant 2 : index
    %43 = arith.index_cast %2 : i32 to index
    %c0_27 = arith.constant 0 : index
    %44 = vector.load %arg2[%c0_25, %c2_26, %43, %c0_27] : memref<1x4x2x128xf32, #tpu.memory_space<vmem>>, vector<1x1x2x128xf32>
    %45 = arith.mulf %44, %32 : vector<1x1x2x128xf32>
    %c0_28 = arith.constant 0 : index
    %c2_29 = arith.constant 2 : index
    %46 = arith.index_cast %2 : i32 to index
    %c0_30 = arith.constant 0 : index
    %47 = vector.load %arg5[%c0_28, %c2_29, %46, %c0_30] : memref<1x4x2x128xf32, #tpu.memory_space<vmem>>, vector<1x1x2x128xf32>
    tpu.vector_store %arg5[%c0_28, %c2_29, %46, %c0_30], %45 {strides = array<i32>} : memref<1x4x2x128xf32, #tpu.memory_space<vmem>>, vector<1x1x2x128xf32>,
    %c0_31 = arith.constant 0 : index
    %c3_32 = arith.constant 3 : index
    %48 = arith.index_cast %2 : i32 to index
    %c0_33 = arith.constant 0 : index
    %49 = vector.load %arg2[%c0_31, %c3_32, %48, %c0_33] : memref<1x4x2x128xf32, #tpu.memory_space<vmem>>, vector<1x1x2x128xf32>
    %50 = arith.mulf %49, %32 : vector<1x1x2x128xf32>
    %c0_34 = arith.constant 0 : index
    %c3_35 = arith.constant 3 : index
    %51 = arith.index_cast %2 : i32 to index
    %c0_36 = arith.constant 0 : index
    %52 = vector.load %arg5[%c0_34, %c3_35, %51, %c0_36] : memref<1x4x2x128xf32, #tpu.memory_space<vmem>>, vector<1x1x2x128xf32>
    tpu.vector_store %arg5[%c0_34, %c3_35, %51, %c0_36], %50 {strides = array<i32>} : memref<1x4x2x128xf32, #tpu.memory_space<vmem>>, vector<1x1x2x128xf32>,
    %c1_i32 = arith.constant 1 : i32
    return
  }
  func.func @transform_0(%arg0: i32, %arg1: i32) -> (i32, i32, i32, i32) {
    %c0_i32 = arith.constant 0 : i32
    %c0_i32_0 = arith.constant 0 : i32
    %c0_i32_1 = arith.constant 0 : i32
    return %arg0, %c0_i32, %arg1, %c0_i32_0 : i32, i32, i32, i32
  }
  func.func @transform_1(%arg0: i32, %arg1: i32) -> i32 {
    %c0_i32 = arith.constant 0 : i32
    %c0_i32_0 = arith.constant 0 : i32
    return %c0_i32 : i32
  }
  func.func @transform_2(%arg0: i32, %arg1: i32) -> i32 {
    %c0_i32 = arith.constant 0 : i32
    %c0_i32_0 = arith.constant 0 : i32
    return %c0_i32 : i32
  }
  func.func @transform_3(%arg0: i32, %arg1: i32) -> (i32, i32, i32, i32) {
    %c0_i32 = arith.constant 0 : i32
    %c0_i32_0 = arith.constant 0 : i32
    %c0_i32_1 = arith.constant 0 : i32
    return %arg0, %c0_i32, %arg1, %c0_i32_0 : i32, i32, i32, i32
  }
}

</mosaic_0001>

<bundles_post_ra>
// kernel: tpu_custom_call.1
= control target key start
LH: loop header
LB: loop body
LE: loop exit
PB: predicated region body
PF: predicated region fallthrough
CT: control target
= control target key end

     0   :  { %s855_s0 = inlined_call_operand.hbm [shape: f32[2,4,2,128], index: 0, kind: input, shape index: {}]   ;;  %s856_s1 = inlined_call_operand.vmem [shape: f32[4], index: 1, kind: input, shape index: {}]   ;;  %s857_s2 = inlined_call_operand.<no memory space> [shape: f32[1], index: 2, kind: input, shape index: {}]   ;;  %s858_s3 = inlined_call_operand.hbm [shape: f32[2,4,2,128], index: 3, kind: output, shape index: {}]  }
   0x1   :  { %8 = sst [smem:[#allocation2]] %s857_s2 }
   0x2   :  { %9 = vsyncpa [#allocation4], 0 }
   0x3   :  { %11 = vsyncpa [#allocation4 + $0x1], 0 }
   0x4   :  { %12 = vsyncpa [#allocation6], 0 }
   0x5   :  { %13 = vsyncpa [#allocation5], 0 }
   0x6   :  { %15 = vsyncpa [#allocation5 + $0x1], 0  ;;  %s659_s14 = smov 0   ;;  %s661_s15 = smov 0  }
   0x7   :  { %s663_s16 = smov 0   ;;  %s665_s17 = smov 0  }
   0x8   :  { %s667_s18 = smov 0   ;;  %s669_s19 = smov 0  }
   0x9 LB: > { %s387_s2 = sadd.s32 4294967295, %s627_s19   ;;  %s388_s20 = sadd.s32 4294967294, %s627_s19   ;;  %s627_s19 = sphi %s669_s19, %s21_s19   ;;  %s623_s18 = sphi %s667_s18, %s876_s18   ;;  %s619_s17 = sphi %s665_s17, %s875_s17   ;;  %s615_s16 = sphi %s663_s16, %s874_s16   ;;  %s611_s15 = sphi %s661_s15, %s873_s15   ;;  %s607_s14 = sphi %s659_s14, %s872_s14  }
   0xa   : > { %s42_s21 = sadd.s32 1, %s615_s16  ;;  %p49_p0 = scmp.ne.s32.totalorder %s615_s16, %s611_s15 }
   0xb   : > { %p50_p1 = scmp.eq.s32.totalorder %s627_s19, 0  ;;  %p55_p2 = scmp.ne.s32.totalorder %s611_s15, %s607_s14 }
   0xc   : > { %p697_p3 = scmp.eq.s32.totalorder %s387_s2, 0  ;;  %p123_p4 = scmp.eq.s32.totalorder %s387_s2, 1 }
   0xd   : > { %p701_p5 = por %p50_p1, %p49_p0  ;;  %p129_p6 = scmp.eq.s32.totalorder %s388_s20, 1 }
   0xe   : > { %p707_p7 = por %p697_p3, %p55_p2  ;;  %p711_p8 = por %p123_p4, %p49_p0 }
   0xf   : > { %p715_p9 = por %p129_p6, %p55_p2  ;;  %p389_p10 = scmp.ge.s32.totalorder %s627_s19, 1 }
  0x10   : > { %s863_s25 = scalar_select %p711_p8, 1, 0 }
  0x11   : > { %s864_s26 = scalar_select %p715_p9, 1, 0 }
  0x12   : > { %p136_p11 = scmp.lt.s32.totalorder %s627_s19, 3  ;;  %s149_s29 = sshll.u32 %s856_s1, 4  ;;  %s150_s29 = int_to_ptr.vmem [resolvable:$true] %s149_s29 }
  0x13   : > { %p440_p0 = scmp.lt.s32.totalorder %s627_s19, 2  ;;  %s33_s6 = sadd.s32 1, %s623_s18 }
  0x14   : > { %p724_p12 = pnand %p389_p10, %p136_p11  ;;  %p745_p6 = scmp.ge.s32.totalorder %s33_s6, 2 }
  0x15   : > { %p734_p2 = pnand %p440_p0, %p701_p5  ;;  %s163_s8 = sand.u32 1, %s615_s16  }
  0x16   : > { %p427_p1 = pneg %p724_p12  ;;  %s500_s9 = scalar_lea.vmem %s150_s29, 16 }
  0x17   : > { %p501_p10 = scmp.ne.s32.totalorder %s150_s29, %s500_s9  ;;  %p508_p13 = scmp.lt.s32.totalorder %s150_s29, %s150_s29 }
  0x18   : > { %p740_p4 = pnand %p427_p1, %p697_p3  ;;  %p509_p9 = scmp.lt.s32.totalorder %s500_s9, %s500_s9 }
  0x1a   : > { %p502_p11 = pneg %p740_p4  ;;  %p510_p8 = por %p509_p9, %p508_p13 }
  0x1c   : > { %p503_p5 = pnand %p502_p11, %p501_p10 }
  0x1e   : > { %p504_p0 = pneg %p503_p5 }
  0x20   : > { %p511_p1 = pnand %p510_p8, %p504_p0 }
  0x22   : > { %514 = shalt.err (!%p511_p1)
}
  0x23   : > { %s629_s10 = smov [#allocation7]   ;;  %s878_s6 = smov (%p745_p6, %s33_s6), 0 }
  0x24   : > { %430 = dma.vmem_to_smem (!%p740_p4), %s150_s29, 16, %s629_s10, [#allocation6]  }
  0x25   : > { %s392_s11 = sshll.u32 %s163_s8, 3  ;;  %s37_s12 = ssub.s32 %s623_s18, %s878_s6 }
  0x26   : > { %p40_p10 = scmp.eq.s32.totalorder %s37_s12, 0  ;;  %s417_s13 = sshll.u32 %s623_s18, 7 }
  0x27   : > { %s174_s23 = scalar_lea.hbm %s855_s0, %s417_s13  ;;  %s167_s27 = scalar_lea.vmem [#allocation3], %s392_s11 }
  0x28   : > { %s175_s28 = sshll.u32 %s167_s27, 4  ;;  %s164_s9 = scalar_lea.sflag [#allocation4], %s163_s8  ;;  %s176_s28 = int_to_ptr.vmem [resolvable:$true] %s175_s28 }
  0x29   : > { %s767_s5 = scalar_select %p40_p10, %s615_s16, %s42_s21  }
  0x2a   : > { %p517_p8 = pneg %p734_p2  ;;  %s528_s29 = scalar_lea.vmem %s176_s28, 128 }
  0x2b   : > { %p529_p9 = scmp.ne.s32.totalorder %s176_s28, %s528_s29  ;;  %s630_s7 = smov [#allocation3]  }
  0x2c   : > { %s533_s10 = sshll.u32 %s630_s7, 4  ;;  %s534_s10 = int_to_ptr.vmem [resolvable:$false] %s533_s10 }
  0x2d   : > { %p531_p13 = pnand %p529_p9, %p517_p8  ;;  %s535_s12 = scalar_lea.vmem %s534_s10, 256 }
  0x2e   : > { %p536_p6 = scmp.lt.s32.totalorder %s176_s28, %s534_s10  ;;  %p537_p11 = scmp.lt.s32.totalorder %s535_s12, %s528_s29 }
  0x2f   : > { %p532_p4 = pneg %p531_p13 }
  0x30   : > { %p538_p5 = por %p537_p11, %p536_p6 }
  0x32   : > { %p539_p0 = pnand %p538_p5, %p532_p4 }
  0x34   : > { %542 = shalt.err (!%p539_p0)
}
  0x35   : > { %s631_s11 = smov 32   ;;  %s632_s21 = smov 2  }
  0x36   : > { %434 = dma.hbm_to_vmem [thread:$0]  (!%p734_p2), %s174_s23, 128, %s176_s28, %s164_s9, %s631_s11, %s631_s11, %s632_s21  }
  0x37   : > { %187 = sbr.rel (%p724_p12) target bundleno = 132 (0x84), region = 32  ;;  %s776_s8 = sand.u32 (!%p724_p12), 1, %s611_s15  }
  0x38   : > { %s396_s13 = sshll.u32 (!%p724_p12), %s776_s8, 3  ;;  %s190_s2 = scalar_lea.sflag (!%p724_p12), [#allocation4], %s776_s8 }
  0x39   : > { %s782_s20 = scalar_lea.vmem (!%p724_p12), [#allocation3], %s396_s13 }
  0x3c   : > { %594 = dma.done.wait (%p707_p7), %s190_s2, 128  }
  0x3d   : > { %596 = vsyncadd (%p707_p7), %s190_s2, 4294967168 }
  0x3e   : > { %598 = dma.done.wait (%p697_p3), [#allocation6], 16  }
  0x3f   : > { %600 = vsyncadd (%p697_p3), [#allocation6], 4294967280 }
  0x40   : > { %202 = sfence }
  0x41   : > { %s223_s30 = sld [smem:[#allocation7]]  ;;  %v222_v0 = vld [vmem:[%s782_s20] sm:$0x3]  ;;  %v399_v1 = vld [vmem:[%s782_s20 + $0x2] sm:$0x3]  ;;  %s220_s22 = scalar_lea.vmem [#allocation8], %s396_s13 }
  0x42   : > { %s400_s4 = sld [smem:[#allocation7 + $0x1]]  ;;  %v401_v3 = vld [vmem:[%s782_s20 + $0x4] sm:$0x3]  ;;  %v403_v6 = vld [vmem:[%s782_s20 + $0x6] sm:$0x3]  ;;  %s284_s24 = sshll.u32 %s220_s22, 4  ;;  %s802_s24 = int_to_ptr.vmem [resolvable:$true] %s284_s24 }
  0x43   : > { %s402_s23 = sld [smem:[#allocation7 + $0x2]]  ;;  %v406_v20 = vld [vmem:[%s782_s20 + $0x2] sm:$0x3]  ;;  %v408_v21 = vld [vmem:[%s782_s20 + $0x4] sm:$0x3]  ;;  %s418_s9 = sshll.u32 %s619_s17, 7 }
  0x44   : > { %s404_s27 = sld [smem:[#allocation7 + $0x3]]  ;;  %v410_v22 = vld [vmem:[%s782_s20 + $0x6] sm:$0x3]  ;;  %s807_s10 = scalar_lea.hbm %s858_s3, %s418_s9 }
  0x45   : > { %s221_s28 = sld [smem:[#allocation2]]  ;;  %s270_s17 = scalar_lea.sflag [#allocation5], %s776_s8 }
  0x46   : > { %s543_s12 = scalar_lea.vmem %s802_s24, 128  ;;  %p869_p7 = scmp.ne.s32.totalorder %s863_s25, 0 }
  0x47   : > { %v224_v2 = vstv %s223_s30  ;;  %p544_p3 = scmp.ne.s32.totalorder %s802_s24, %s543_s12  ;;  %s633_s11 = smov [#allocation8]  }
  0x48   : > { %v225_v4 = vmul.f32 %v224_v2, %v222_v0  ;;  %v230_v5 = vstv %s400_s4  ;;  %s547_s21 = sshll.u32 %s633_s11, 4  ;;  %s548_s21 = int_to_ptr.vmem [resolvable:$false] %s547_s21 }
  0x49   : > { %v231_v7 = vmul.f32 %v399_v1, %v230_v5  ;;  %v237_v8 = vstv %s402_s23  ;;  %p545_p12 = pnand %p544_p3, %p869_p7  ;;  %s549_s13 = scalar_lea.vmem %s548_s21, 256 }
  0x4a   : > { %v238_v9 = vmul.f32 %v401_v3, %v237_v8  ;;  %v244_v10 = vstv %s404_s27  ;;  %p550_p1 = scmp.lt.s32.totalorder %s802_s24, %s548_s21  ;;  %p551_p10 = scmp.lt.s32.totalorder %s549_s13, %s543_s12 }
  0x4b   : > { %v232_v11 = vadd.f32 %v231_v7, %v225_v4  ;;  %v245_v12 = vmul.f32 %v403_v6, %v244_v10  ;;  %v247_v14 = vstv %s221_s28  ;;  %p546_p2 = pneg %p545_p12 }
  0x4c   : > { %p552_p8 = por %p551_p10, %p550_p1 }
  0x4d   : > { %v239_v13 = vadd.f32 %v238_v9, %v232_v11 }
  0x4e   : > { %p553_p9 = pnand %p552_p8, %p546_p2 }
  0x4f   : > { %v246_v15 = vadd.f32 %v245_v12, %v239_v13 }
  0x51   : > { %v248_v16 = vadd.f32 %v247_v14, %v246_v15 }
  0x53   : > { %v405_v17 = vmul.f32 -1.442695, %v248_v16 }
  0x55   : > { %496 = vpow2.f32 %v405_v17 }
  0x62   : > { %v497_v18 = vpop.eup %496 }
  0x63   : > { %v252_v19 = vadd.f32 1.0, %v497_v18 }
  0x65   : > { %498 = vrcp.f32 %v252_v19 }
  0x72   : > { %v499_v23 = vpop.eup %498 }
  0x73   : > { %v255_v24 = vmul.f32 %v499_v23, %v222_v0  ;;  %v258_v25 = vmul.f32 %v499_v23, %v406_v20  ;;  %v262_v26 = vmul.f32 %v499_v23, %v408_v21  ;;  %v266_v27 = vmul.f32 %v499_v23, %v410_v22 }
  0x75   : > { %256 = vst [vmem:[%s220_s22] sm:$0x3] %v255_v24  ;;  %407 = vst [vmem:[%s220_s22 + $0x2] sm:$0x3] %v258_v25 }
  0x76   : > { %409 = vst [vmem:[%s220_s22 + $0x4] sm:$0x3] %v262_v26  ;;  %411 = vst [vmem:[%s220_s22 + $0x6] sm:$0x3] %v266_v27 }
  0x77   : > { %556 = shalt.err (!%p553_p9)
}
  0x78   : > { %s557_s2 = scalar_lea.hbm %s807_s10, 128  ;;  %s561_s4 = scalar_lea.hbm %s858_s3, 256 }
  0x79   : > { %p558_p13 = scmp.ne.s32.totalorder %s807_s10, %s557_s2  ;;  %p562_p11 = scmp.lt.s32.totalorder %s807_s10, %s858_s3 }
  0x7a   : > { %p563_p5 = scmp.lt.s32.totalorder %s561_s4, %s557_s2 }
  0x7b   : > { %p559_p4 = pnand %p558_p13, %p869_p7 }
  0x7c   : > { %p564_p0 = por %p563_p5, %p562_p11 }
  0x7d   : > { %p560_p6 = pneg %p559_p4 }
  0x7f   : > { %p565_p3 = pnand %p564_p0, %p560_p6 }
  0x81   : > { %568 = shalt.err (!%p565_p3)
}
  0x82   : > { %s634_s28 = smov 32   ;;  %s635_s22 = smov 2  }
  0x83   : > { %425 = dma.vmem_to_hbm [thread:$0]  (%p869_p7), %s802_s24, 128, %s807_s10, %s270_s17, %s634_s28, %s634_s28, %s635_s22  }
  0x84 PF: > { %s299_s9 = sand.u32 1, %s607_s14   ;;  %p870_p12 = scmp.ne.s32.totalorder %s864_s26, 0 }
  0x85   : > { %p871_p2 = scmp.ge.s32.totalorder %s627_s19, 2  ;;  %s300_s29 = scalar_lea.sflag [#allocation5], %s299_s9 }
  0x87   : > { %p436_p1 = pnand %p871_p2, %p870_p12 }
  0x89   : > { %p437_p10 = pneg %p436_p1 }
  0x8b   : > { %602 = dma.done.wait (%p437_p10), %s300_s29, 128  }
  0x8c   : > { %604 = vsyncadd (%p437_p10), %s300_s29, 4294967168  ;;  %s21_s19 = sadd.s32 1, %s627_s19   ;;  %s872_s14 = smov %s611_s15 }
  0x8d   : > { %p18_p8 = scmp.ge.s32.totalorder %s21_s19, 4   ;;  %s873_s15 = smov %s615_s16 }
  0x8e   : > { %s874_s16 = smov %s767_s5  ;;  %s875_s17 = smov %s623_s18 }
  0x8f   : > { %s876_s18 = smov %s878_s6  ;;  %20 = sbr.rel (!%p18_p8) target bundleno = 9 (0x9), region = 88 }
  0x94   :  { %305 = vsyncpa [#allocation4], 1 }
  0x95   :  { %307 = vsyncpa [#allocation4 + $0x1], 1 }
  0x96   :  { %308 = vsyncpa [#allocation5], 1 }
  0x97   :  { %310 = vsyncpa [#allocation5 + $0x1], 1 }
  0x98   :  { %311 = vsyncpa [#allocation6], 1 }
  0x99   :  { %313 = vsyncpa [#allocation6 + $0x1], 1 }

</bundles_post_ra>
